<compile_context>
chip_gen: v5e
topology: v5e:2x2
jax: 0.10.0
libtpu: 0.0.40
codegen_flags: <defaults>
</compile_context>

<pallas_src>
import functools

import jax
import jax.numpy as jnp
from jax.experimental import pallas as pl
from jax.experimental.pallas import tpu as pltpu

NEG_SLOPE = 0.2                       # nn.LeakyReLU(0.2) in the module
FUSED_MAX_BLOCK_BYTES = 4 * 1024 * 1024   # per-sample slab cap for full fusion


def _vmem_limit(nbytes):
    """Clamp a computed VMEM need to a safe scoped-VMEM request."""
    return int(min(64 * 1024 * 1024, max(32 * 1024 * 1024, nbytes)))


def _attention_column(pooled_col, w1_ref, w2_ref):
    """(C, 1) pooled means -> (C, 1) sigmoid attention column (column MLP)."""
    h = jnp.dot(w1_ref[...], pooled_col, preferred_element_type=jnp.float32)
    h = jnp.where(h >= 0, h, NEG_SLOPE * h)            # LeakyReLU(0.2)
    s = jnp.dot(w2_ref[...], h, preferred_element_type=jnp.float32)
    return jax.nn.sigmoid(s)                            # (C, 1)


# ----------------------------------------------------------------------------
# Fully fused kernel (small x): pool + MLP + scale in one pass over x.
# ----------------------------------------------------------------------------
def _fused_kernel(w1_ref, w2_ref, x_ref, o_ref, *, inv_area):
    xv = x_ref[...].astype(jnp.float32)                       # (1, C, S)
    pooled = jnp.sum(xv, axis=2, keepdims=True)[0] * inv_area  # (C, 1)
    a = _attention_column(pooled, w1_ref, w2_ref)              # (C, 1)
    o_ref[...] = (xv * a[None]).astype(o_ref.dtype)


# ----------------------------------------------------------------------------
# Kernel 1 (large x): global average pool == lane-sum with resident accumulator.
# ----------------------------------------------------------------------------
def _pool_sum_kernel(x_ref, o_ref, *, ts, s_total):
    j = pl.program_id(1)

    @pl.when(j == 0)
    def _():
        o_ref[...] = jnp.zeros_like(o_ref)

    xv = x_ref[...].astype(jnp.float32)                        # (1, C, TS)
    if s_total % ts != 0:            # trace-time: mask the ragged spatial tail
        lane = jax.lax.broadcasted_iota(jnp.int32, xv.shape, 2)
        xv = jnp.where(j * ts + lane < s_total, xv, 0.0)
    o_ref[...] += jnp.sum(xv, axis=2, keepdims=True)           # (1, C, 1)


# ----------------------------------------------------------------------------
# Kernel 2 (large x): squeeze-excite MLP fused into the x * attention scale.
# ----------------------------------------------------------------------------
def _attn_scale_kernel(sums_ref, w1_ref, w2_ref, x_ref, o_ref, *, inv_area):
    pooled = sums_ref[0] * inv_area                            # (C, 1)
    a = _attention_column(pooled, w1_ref, w2_ref)              # (C, 1), tiny
    # OOB lanes of a ragged last tile read garbage, but their writes are
    # dropped by Pallas, so no masking is needed here.
    o_ref[...] = (x_ref[...] * a[None]).astype(o_ref.dtype)


def channel_attention_forward(x, params, *, max_block_bytes=FUSED_MAX_BLOCK_BYTES):
    """x: (N, C, H, W) float32 NCHW, exactly like the PyTorch module.

    params = (w1, w2) with the 1x1-conv weights in their natural (Cout, Cin)
    layout: w1 (C//r, C), w2 (C, C//r).
    """
    w1, w2 = params
    N, C, H, W = x.shape
    hd = w1.shape[0]
    S = H * W
    inv_area = 1.0 / S
    itemsize = x.dtype.itemsize

    x3 = x.reshape(N, C, S)            # metadata-only, lane-dense spatial view
    full_block_bytes = C * S * itemsize

    # ------------------------------------------------------------------ fused
    if full_block_bytes <= max_block_bytes:
        out3 = pl.pallas_call(
            functools.partial(_fused_kernel, inv_area=inv_area),
            grid=(N,),
            in_specs=[
                pl.BlockSpec((hd, C), lambda n: (0, 0)),
                pl.BlockSpec((C, hd), lambda n: (0, 0)),
                pl.BlockSpec((1, C, S), lambda n: (n, 0, 0)),
            ],
            out_specs=pl.BlockSpec((1, C, S), lambda n: (n, 0, 0)),
            out_shape=jax.ShapeDtypeStruct((N, C, S), x.dtype),
            compiler_params=pltpu.CompilerParams(
                dimension_semantics=("parallel",),
                vmem_limit_bytes=_vmem_limit(4 * full_block_bytes + (2 << 20))),
            cost_estimate=pl.CostEstimate(
                flops=2 * N * C * S + 4 * N * C * hd,
                transcendentals=N * C,
                bytes_accessed=2 * N * C * S * itemsize),
        )(w1, w2, x3)
        return out3.reshape(N, C, H, W)

    # ------------------------------------------------------------------ tiled
    # Spatial tile: biggest 128-multiple such that one (1, C, TS) block stays
    # within the per-block byte budget (cross-generation safe).
    TS = max(128, (max_block_bytes // (C * itemsize)) // 128 * 128)
    ns = pl.cdiv(S, TS)
    block_bytes = C * TS * itemsize

    # --- pass 1: global average pool (sums) ---------------------------------
    sums = pl.pallas_call(
        functools.partial(_pool_sum_kernel, ts=TS, s_total=S),
        grid=(N, ns),
        in_specs=[pl.BlockSpec((1, C, TS), lambda n, j: (n, 0, j))],
        out_specs=pl.BlockSpec((1, C, 1), lambda n, j: (n, 0, 0)),
        out_shape=jax.ShapeDtypeStruct((N, C, 1), jnp.float32),
        compiler_params=pltpu.CompilerParams(
            dimension_semantics=("parallel", "arbitrary"),
            vmem_limit_bytes=_vmem_limit(2 * block_bytes + (2 << 20))),
        cost_estimate=pl.CostEstimate(
            flops=N * C * S, transcendentals=0,
            bytes_accessed=N * C * S * itemsize + N * C * 4),
    )(x3)

    # --- pass 2: MLP fused into the x * attention scale ---------------------
    out3 = pl.pallas_call(
        functools.partial(_attn_scale_kernel, inv_area=inv_area),
        grid=(N, ns),
        in_specs=[
            pl.BlockSpec((1, C, 1), lambda n, j: (n, 0, 0)),
            pl.BlockSpec((hd, C), lambda n, j: (0, 0)),
            pl.BlockSpec((C, hd), lambda n, j: (0, 0)),
            pl.BlockSpec((1, C, TS), lambda n, j: (n, 0, j)),
        ],
        out_specs=pl.BlockSpec((1, C, TS), lambda n, j: (n, 0, j)),
        out_shape=jax.ShapeDtypeStruct((N, C, S), x.dtype),
        compiler_params=pltpu.CompilerParams(
            dimension_semantics=("parallel", "parallel"),
            vmem_limit_bytes=_vmem_limit(4 * block_bytes + (2 << 20))),
        cost_estimate=pl.CostEstimate(
            flops=N * C * S + 4 * N * C * hd * ns,
            transcendentals=N * C * ns,
            bytes_accessed=2 * N * C * S * itemsize),
    )(sums, w1, w2, x3)

    return out3.reshape(N, C, H, W)


def init_params(key, channel, ratio=16):
    """1x1-conv weights (bias=False) in (Cout, Cin) layout, like PyTorch."""
    hidden = channel // ratio
    k1, k2 = jax.random.split(key)
    w1 = 0.1 * jax.random.normal(k1, (hidden, channel), jnp.float32)  # C -> C/r
    w2 = 0.1 * jax.random.normal(k2, (channel, hidden), jnp.float32)  # C/r -> C
    return (w1, w2)


if __name__ == "__main__":
    key = jax.random.PRNGKey(0)
    kx, kp = jax.random.split(key)

    N, C, H, W, ratio = 2, 64, 16, 16, 16        # C // ratio = 4 hidden channels
    x = jax.random.normal(kx, (N, C, H, W), jnp.float32)
    params = init_params(kp, C, ratio)
    w1, w2 = params

    # Plain-JAX reference (mirrors the PyTorch module).
    pooled_ref = x.mean(axis=(2, 3))                         # (N, C)
    h_ref = pooled_ref @ w1.T                                # (N, C/r)
    h_ref = jnp.where(h_ref >= 0, h_ref, NEG_SLOPE * h_ref)
    attn_ref = jax.nn.sigmoid(h_ref @ w2.T)                  # (N, C)
    ref = x * attn_ref[:, :, None, None]

    # Path 1 (demo default): fully fused single-kernel pass.
    fwd = jax.jit(functools.partial(channel_attention_forward, params=params))
    out = jax.block_until_ready(fwd(x))
    assert out.shape == (N, C, H, W)
    assert out.dtype == jnp.float32
    assert bool(jnp.all(jnp.isfinite(out)))
    assert bool(jnp.allclose(out, ref, atol=1e-3, rtol=1e-3))

    # Path 2: force the tiled two-kernel pipeline (pool + fused MLP/scale),
    # exercising the large-input code path at the same small shape.
    fwd_tiled = jax.jit(functools.partial(
        channel_attention_forward, params=params, max_block_bytes=32 * 1024))
    out_t = jax.block_until_ready(fwd_tiled(x))
    assert bool(jnp.all(jnp.isfinite(out_t)))
    assert bool(jnp.allclose(out_t, ref, atol=1e-3, rtol=1e-3))

    print("KERNEL_OK")
</pallas_src>

<mosaic_0001>
module attributes {stable_mosaic.version = 11 : i64} {
  func.func @_fused_kernel(%arg0: i32, %arg1: memref<4x64xf32, #tpu.memory_space<vmem>>, %arg2: memref<64x4xf32, #tpu.memory_space<vmem>>, %arg3: memref<1x64x256xf32, #tpu.memory_space<vmem>>, %arg4: memref<1x64x256xf32, #tpu.memory_space<vmem>>) attributes {dimension_semantics = [#tpu.dimension_semantics<parallel>], iteration_bounds = array<i64: 2>, scalar_prefetch = 0 : i64, scratch_operands = 0 : i64, tpu.core_type = #tpu.core_type<tc>, window_params = [{pipeline_mode = #tpu.pipeline_mode<synchronous>, transform_indices = @transform_0, window_bounds = array<i64: 4, 64>}, {pipeline_mode = #tpu.pipeline_mode<synchronous>, transform_indices = @transform_1, window_bounds = array<i64: 64, 4>}, {transform_indices = @transform_2, window_bounds = array<i64: 1, 64, 256>}, {transform_indices = @transform_3, window_bounds = array<i64: 1, 64, 256>}]} {
    %c0 = arith.constant 0 : index
    %c0_0 = arith.constant 0 : index
    %c0_1 = arith.constant 0 : index
    %0 = vector.load %arg3[%c0, %c0_0, %c0_1] : memref<1x64x256xf32, #tpu.memory_space<vmem>>, vector<1x64x256xf32>
    %cst = arith.constant dense<0.000000e+00> : vector<1x64xf32>
    %1 = vector.multi_reduction <add>, %0, %cst [2] : vector<1x64x256xf32> to vector<1x64xf32>
    %2 = vector.shape_cast %1 : vector<1x64xf32> to vector<1x64x1xf32>
    %3 = vector.shape_cast %2 : vector<1x64x1xf32> to vector<64x1xf32>
    %cst_2 = arith.constant 3.906250e-03 : f32
    %4 = vector.broadcast %cst_2 : f32 to vector<64x1xf32>
    %5 = arith.mulf %3, %4 : vector<64x1xf32>
    %c0_3 = arith.constant 0 : index
    %c0_4 = arith.constant 0 : index
    %6 = vector.load %arg1[%c0_3, %c0_4] : memref<4x64xf32, #tpu.memory_space<vmem>>, vector<4x64xf32>
    %cst_5 = arith.constant dense<0.000000e+00> : vector<4x1xf32>
    %7 = tpu.matmul %6, %5, %cst_5 {dimension_numbers = #tpu.dot_dimension_numbers<[1], [0], [0], [1], [0, 0, 1, 1], [], []>} : vector<4x64xf32>, vector<64x1xf32>, vector<4x1xf32> -> vector<4x1xf32>
    %cst_6 = arith.constant 0.000000e+00 : f32
    %8 = vector.broadcast %cst_6 : f32 to vector<4x1xf32>
    %9 = arith.cmpf oge, %7, %8 : vector<4x1xf32>
    %cst_7 = arith.constant 2.000000e-01 : f32
    %10 = vector.broadcast %cst_7 : f32 to vector<4x1xf32>
    %11 = arith.mulf %10, %7 : vector<4x1xf32>
    %12 = arith.select %9, %7, %11 : vector<4x1xi1>, vector<4x1xf32>
    %c0_8 = arith.constant 0 : index
    %c0_9 = arith.constant 0 : index
    %13 = vector.load %arg2[%c0_8, %c0_9] : memref<64x4xf32, #tpu.memory_space<vmem>>, vector<64x4xf32>
    %cst_10 = arith.constant dense<0.000000e+00> : vector<64x1xf32>
    %14 = tpu.matmul %13, %12, %cst_10 {dimension_numbers = #tpu.dot_dimension_numbers<[1], [0], [0], [1], [0, 0, 1, 1], [], []>} : vector<64x4xf32>, vector<4x1xf32>, vector<64x1xf32> -> vector<64x1xf32>
    %15 = arith.negf %14 : vector<64x1xf32>
    %16 = math.exp %15 : vector<64x1xf32>
    %cst_11 = arith.constant 1.000000e+00 : f32
    %17 = vector.broadcast %cst_11 : f32 to vector<64x1xf32>
    %18 = arith.addf %17, %16 : vector<64x1xf32>
    %19 = arith.divf %17, %18 : vector<64x1xf32>
    %20 = vector.shape_cast %19 : vector<64x1xf32> to vector<1x64x1xf32>
    %21 = vector.broadcast %20 : vector<1x64x1xf32> to vector<1x64x256xf32>
    %22 = arith.mulf %0, %21 : vector<1x64x256xf32>
    %c0_12 = arith.constant 0 : index
    %c0_13 = arith.constant 0 : index
    %c0_14 = arith.constant 0 : index
    %23 = vector.load %arg4[%c0_12, %c0_13, %c0_14] : memref<1x64x256xf32, #tpu.memory_space<vmem>>, vector<1x64x256xf32>
    tpu.vector_store %arg4[%c0_12, %c0_13, %c0_14], %22 {strides = array<i32>} : memref<1x64x256xf32, #tpu.memory_space<vmem>>, vector<1x64x256xf32>,
    return
  }
  func.func @transform_0(%arg0: i32) -> (i32, i32) {
    %c0_i32 = arith.constant 0 : i32
    %c0_i32_0 = arith.constant 0 : i32
    %c0_i32_1 = arith.constant 0 : i32
    return %c0_i32, %c0_i32_0 : i32, i32
  }
  func.func @transform_1(%arg0: i32) -> (i32, i32) {
    %c0_i32 = arith.constant 0 : i32
    %c0_i32_0 = arith.constant 0 : i32
    %c0_i32_1 = arith.constant 0 : i32
    return %c0_i32, %c0_i32_0 : i32, i32
  }
  func.func @transform_2(%arg0: i32) -> (i32, i32, i32) {
    %c0_i32 = arith.constant 0 : i32
    %c0_i32_0 = arith.constant 0 : i32
    %c0_i32_1 = arith.constant 0 : i32
    return %arg0, %c0_i32, %c0_i32_0 : i32, i32, i32
  }
  func.func @transform_3(%arg0: i32) -> (i32, i32, i32) {
    %c0_i32 = arith.constant 0 : i32
    %c0_i32_0 = arith.constant 0 : i32
    %c0_i32_1 = arith.constant 0 : i32
    return %arg0, %c0_i32, %c0_i32_0 : i32, i32, i32
  }
}

</mosaic_0001>

<bundles_post_ra>
// kernel: channel_attention_forward.1
= control target key start
LH: loop header
LB: loop body
LE: loop exit
PB: predicated region body
PF: predicated region fallthrough
CT: control target
= control target key end

     0   :  { %s710_s12 = smov 0   ;;  %s915_s0 = inlined_call_operand.vmem [shape: f32[4,64], index: 0, kind: input, shape index: {}]   ;;  %s916_s1 = inlined_call_operand.vmem [shape: f32[64,4], index: 1, kind: input, shape index: {}]   ;;  %s917_s2 = inlined_call_operand.vmem [shape: f32[2,64,256], index: 2, kind: input, shape index: {}]   ;;  %s918_s3 = inlined_call_operand.vmem [shape: f32[2,64,256], index: 3, kind: output, shape index: {}]  }
   0x1 LB: > { %s604_s13 = sadd.s32 4294967295, %s687_s12   ;;  %p608_p0 = scmp.ge.s32.totalorder %s687_s12, 1  ;;  %s687_s12 = sphi %s710_s12, %s13_s12  }
   0x2   : > { %p137_p1 = scmp.lt.s32.totalorder %s687_s12, 3 }
   0x4   : > { %p138_p2 = pnand %p608_p0, %p137_p1 }
   0x5   : > { %p161_p3 = scmp.lt.s32.totalorder (!%p138_p2), %s604_s13, 1 }
   0x6   : > { %141 = sbr.rel (%p138_p2) target bundleno = 593 (0x251), region = 32 }
   0xb   : > { %s922_s13 = smov (!%p161_p3, %s604_s13), 1  ;;  %v219_v40 = vld [vmem:[%s915_s0] sm:$0xf]  ;;  %vm220_vm0 = vcmask 523264   ;;  %vm280_vm2 = vcmask 1043456   ;;  %vm255_vm3 = vcmask 31744  }
   0xc   : > { %s633_s14 = sshll.u32 %s922_s13, 7  ;;  %v247_v43 = vld [vmem:[%s916_s1] sm:$0xff]  ;;  %v250_v45 = vld [vmem:[%s916_s1 + $0x18] sm:$0xff]  ;;  %v253_v46 = vld [vmem:[%s916_s1 + $0x30] sm:$0xff]  ;;  %v689_v52 = vmov 0  }
   0xd   : > { %s165_s17 = scalar_lea.vmem %s917_s2, %s633_s14  ;;  %v248_v47 = vld [vmem:[%s916_s1 + $0x8] sm:$0xff]  ;;  %v251_v48 = vld [vmem:[%s916_s1 + $0x20] sm:$0xff]  ;;  %v254_v49 = vld [vmem:[%s916_s1 + $0x38] sm:$0xff]  ;;  %646 = vset.pattern.permute.xlu2 %v689_v52  ;;  %647 = vset.pattern.permute.xlu0 %v689_v52  ;;  %s878_s11 = scalar_lea.vmem %s918_s3, %s633_s14 }
   0xe   : > { %v726_v0 = vld [vmem:[%s165_s17 + $0x70] sm:$0xff]  ;;  %v728_v1 = vld [vmem:[%s165_s17 + $0x78] sm:$0xff]  ;;  %v744_v9 = vld [vmem:[%s165_s17 + $0x60] sm:$0xff]  ;;  %648 = vset.pattern.permute.xlu1 %v689_v52 }
   0xf   : > { %v730_v2 = vld [vmem:[%s165_s17 + $0x50] sm:$0xff]  ;;  %v208_v3 = vadd.f32 %v728_v1, %v726_v0  ;;  %v734_v4 = vld [vmem:[%s165_s17 + $0x58] sm:$0xff]  ;;  %v746_v10 = vld [vmem:[%s165_s17 + $0x68] sm:$0xff] }
  0x10   : > { %v202_v5 = vadd.f32 %v734_v4, %v730_v2  ;;  %v738_v6 = vld [vmem:[%s165_s17 + $0x30] sm:$0xff]  ;;  %v740_v7 = vld [vmem:[%s165_s17 + $0x38] sm:$0xff]  ;;  %v748_v11 = vld [vmem:[%s165_s17 + $0x40] sm:$0xff]  ;;  %v205_v15 = vadd.f32 %v746_v10, %v744_v9 }
  0x11   : > { %209 = vadd.xlane.f32.xlu0 %v208_v3  ;;  %v196_v8 = vadd.f32 %v740_v7, %v738_v6  ;;  %v750_v12 = vld [vmem:[%s165_s17 + $0x48] sm:$0xff]  ;;  %v752_v13 = vld [vmem:[%s165_s17 + $0x20] sm:$0xff]  ;;  %v762_v18 = vld [vmem:[%s165_s17 + $0x10] sm:$0xff] }
  0x12   : > { %203 = vadd.xlane.f32.xlu1 %v202_v5  ;;  %v754_v14 = vld [vmem:[%s165_s17 + $0x28] sm:$0xff]  ;;  %v199_v16 = vadd.f32 %v750_v12, %v748_v11  ;;  %v764_v19 = vld [vmem:[%s165_s17 + $0x18] sm:$0xff]  ;;  %v766_v20 = vld [vmem:[%s165_s17] sm:$0xff] }
  0x13   : > { %197 = vadd.xlane.f32.xlu2 %v196_v8  ;;  %v193_v17 = vadd.f32 %v754_v14, %v752_v13  ;;  %v768_v21 = vld [vmem:[%s165_s17 + $0x8] sm:$0xff]  ;;  %v190_v22 = vadd.f32 %v764_v19, %v762_v18  ;;  %v249_v50 = vld [vmem:[%s916_s1 + $0x10] sm:$0xff] }
  0x14   : > { %v187_v23 = vadd.f32 %v768_v21, %v766_v20  ;;  %v252_v51 = vld [vmem:[%s916_s1 + $0x28] sm:$0xff] }
  0x19   : > { %206 = vadd.xlane.f32.xlu0 %v205_v15 }
  0x1a   : > { %200 = vadd.xlane.f32.xlu1 %v199_v16 }
  0x1b   : > { %194 = vadd.xlane.f32.xlu2 %v193_v17 }
  0x21   : > { %191 = vadd.xlane.f32.xlu0 %v190_v22 }
  0x22   : > { %188 = vadd.xlane.f32.xlu1 %v187_v23 }
  0x84   : > { %v210_v24 = vpop.xlane.xlu0 %209 }
  0x85   : > { %v218_v25 = vmul.f32 0.00390625, %v210_v24  ;;  %v204_v26 = vpop.xlane.xlu1 %203 }
  0x86   : > { %v198_v27 = vpop.xlane.xlu2 %197  ;;  %v216_v31 = vmul.f32 0.00390625, %v204_v26 }
  0x87   : > { %232 = vmatpush.msra.mxu0 %v218_v25  ;;  %v214_v34 = vmul.f32 0.00390625, %v198_v27 }
  0x8c   : > { %v207_v28 = vpop.xlane.xlu0 %206 }
  0x8d   : > { %v217_v29 = vmul.f32 0.00390625, %v207_v28  ;;  %v201_v30 = vpop.xlane.xlu1 %200 }
  0x8e   : > { %v215_v32 = vmul.f32 0.00390625, %v201_v30  ;;  %v195_v33 = vpop.xlane.xlu2 %194 }
  0x8f   : > { %233 = vmatpush.msra.mxu0 %v217_v29  ;;  %v213_v35 = vmul.f32 0.00390625, %v195_v33 }
  0x91   : > { %234 = vmatpush.msra.mxu0 %v216_v31 }
  0x93   : > { %235 = vmatpush.msra.mxu0 %v215_v32 }
  0x94   : > { %v192_v36 = vpop.xlane.xlu0 %191 }
  0x95   : > { %236 = vmatpush.msra.mxu0 %v214_v34  ;;  %v212_v37 = vmul.f32 0.00390625, %v192_v36  ;;  %v189_v38 = vpop.xlane.xlu1 %188 }
  0x96   : > { %v211_v39 = vmul.f32 0.00390625, %v189_v38 }
  0x97   : > { %237 = vmatpush.msra.mxu0 %v213_v35 }
  0x99   : > { %238 = vmatpush.msra.mxu0 %v212_v37 }
  0x9b   : > { %239 = vmatpush.msra.mxu0 %v211_v39 }
  0x9c   : > { %613 = vmatmul.msk.f32.vlgmr.msra.gmra.mxu0 %vm220_vm0, %v219_v40 }
 0x119   : > { %v241_v41 = vpop.f32.mrf.mxu0 }
 0x11a   : > { %vm244_vm1 = vcmp.ge.f32.partialorder %v241_v41, 0.0  ;;  %v245_v42 = vmul.f32 0.2, %v241_v41 }
 0x11c   : > { %v246_v44 = vsel %vm244_vm1, %v241_v41, %v245_v42 }
 0x11d   : > { %614 = vmatpush.msk.msra.mxu1 %vm280_vm2, %v246_v44  ;;  %635 = vmatpush.msk.msra.mxu2 %vm280_vm2, %v246_v44 }
 0x11e   : > { %636 = vmatpush.msk.msra.mxu3 %vm280_vm2, %v246_v44  ;;  %615 = vmatmul.msk.f32.vlgmr.msra.gmra.mxu1 %vm255_vm3, %v247_v43 }
 0x11f   : > { %618 = vmatmul.msk.f32.vlgmr.msra.gmra.mxu2 %vm255_vm3, %v250_v45  ;;  %621 = vmatmul.msk.f32.vlgmr.msra.gmra.mxu3 %vm255_vm3, %v253_v46 }
 0x126   : > { %616 = vmatmul.msk.f32.gmra.mxu1 %vm255_vm3, %v248_v47 }
 0x127   : > { %619 = vmatmul.msk.f32.gmra.mxu2 %vm255_vm3, %v251_v48  ;;  %622 = vmatmul.msk.f32.gmra.mxu3 %vm255_vm3, %v254_v49 }
 0x12e   : > { %617 = vmatmul.msk.f32.gmra.mxu1 %vm255_vm3, %v249_v50 }
 0x12f   : > { %620 = vmatmul.msk.f32.gmra.mxu2 %vm255_vm3, %v252_v51 }
 0x19b   : > { %v301_v53 = vpop.f32.mrf.mxu1 }
 0x19c   : > { %v623_v54 = vmul.f32 -1.442695, %v301_v53 }
 0x19e   : > { %649 = vpow2.f32 %v623_v54 }
 0x1a2   : > { %v310_v55 = vpop.f32.mrf.mxu2  ;;  %v319_v56 = vpop.f32.mrf.mxu3 }
 0x1a3   : > { %v626_v57 = vmul.f32 -1.442695, %v310_v55  ;;  %v304_v58 = vpop.f32.mrf.mxu1  ;;  %v629_v61 = vmul.f32 -1.442695, %v319_v56 }
 0x1a4   : > { %v650_v59 = vpop.eup %649  ;;  %v624_v60 = vmul.f32 -1.442695, %v304_v58 }
 0x1a5   : > { %v349_v62 = vadd.f32 1.0, %v650_v59  ;;  %651 = vpow2.f32 %v626_v57 }
 0x1a6   : > { %653 = vpow2.f32 %v624_v60 }
 0x1a7   : > { %655 = vrcp.f32 %v349_v62  ;;  %v368_v30 = vand.u32 2147483648, %v349_v62  ;;  %v366_v33 = vand.u32 2147483647, %v349_v62  ;;  %vm362_vm5 = vweird.f32 %v349_v62 }
 0x1a8   : > { %657 = vpow2.f32 %v629_v61 }
 0x1a9   : > { %v369_v40 = vor.u32 1.1754944e-38, %v368_v30  ;;  %vm367_vm7 = vcmp.eq.f32.partialorder %v366_v33, 8.507059e+37 }
 0x1aa   : > { %v313_v63 = vpop.f32.mrf.mxu2  ;;  %v322_v15 = vpop.f32.mrf.mxu3 }
 0x1ab   : > { %v652_v3 = vpop.eup %651  ;;  %v627_v5 = vmul.f32 -1.442695, %v313_v63  ;;  %v307_v8 = vpop.f32.mrf.mxu1  ;;  %v630_v26 = vmul.f32 -1.442695, %v322_v15 }
 0x1ac   : > { %v654_v16 = vpop.eup %653  ;;  %v809_v17 = vadd.f32 1.0, %v652_v3  ;;  %v625_v22 = vmul.f32 -1.442695, %v307_v8 }
 0x1ad   : > { %v656_v23 = vpop.eup %655  ;;  %v811_v24 = vadd.f32 1.0, %v654_v16  ;;  %659 = vpow2.f32 %v627_v5 }
 0x1ae   : > { %v658_v25 = vpop.eup %657  ;;  %661 = vrcp.f32 %v809_v17  ;;  %v358_v27 = vmul.f32 %v656_v23, %v349_v62  ;;  %vm363_vm4 = vweird.f32 %v656_v23  ;;  %v413_v49 = vand.u32 2147483648, %v809_v17 }
 0x1af   : > { %663 = vrcp.f32 %v811_v24  ;;  %v815_v28 = vadd.f32 1.0, %v658_v25  ;;  %vm364_vm6 = vmor %vm362_vm5, %vm363_vm4  ;;  %v383_v51 = vand.u32 2147483648, %v811_v24  ;;  %v411_v55 = vand.u32 2147483647, %v809_v17 }
 0x1b0   : > { %665 = vpow2.f32 %v625_v22  ;;  %v359_v29 = vsub.f32 1.0, %v358_v27  ;;  %v381_v57 = vand.u32 2147483647, %v811_v24  ;;  %vm407_vm10 = vweird.f32 %v809_v17 }
 0x1b1   : > { %667 = vpow2.f32 %v630_v26  ;;  %vm377_vm11 = vweird.f32 %v811_v24  ;;  %v414_v62 = vor.u32 1.1754944e-38, %v413_v49  ;;  %v384_v8 = vor.u32 1.1754944e-38, %v383_v51 }
 0x1b2   : > { %v316_v31 = vpop.f32.mrf.mxu2  ;;  %v360_v32 = vmul.f32 %v656_v23, %v359_v29  ;;  %669 = vrcp.f32 %v815_v28  ;;  %vm412_vm14 = vcmp.eq.f32.partialorder %v411_v55, 8.507059e+37  ;;  %vm382_vm15 = vcmp.eq.f32.partialorder %v381_v57, 8.507059e+37 }
 0x1b3   : > { %v660_v34 = vpop.eup %659  ;;  %v628_v35 = vmul.f32 -1.442695, %v316_v31  ;;  %vm452_vm2 = vweird.f32 %v815_v28 }
 0x1b4   : > { %v662_v36 = vpop.eup %661  ;;  %v818_v37 = vadd.f32 1.0, %v660_v34  ;;  %v361_v38 = vadd.f32 %v656_v23, %v360_v32 }
 0x1b5   : > { %v664_v39 = vpop.eup %663  ;;  %671 = vpow2.f32 %v628_v35  ;;  %v403_v41 = vmul.f32 %v662_v36, %v809_v17  ;;  %vm408_vm8 = vweird.f32 %v662_v36 }
 0x1b6   : > { %v666_v42 = vpop.eup %665  ;;  %673 = vrcp.f32 %v818_v37  ;;  %v365_v43 = vsel %vm364_vm6, %v656_v23, %v361_v38  ;;  %v373_v44 = vmul.f32 %v664_v39, %v811_v24  ;;  %vm378_vm9 = vweird.f32 %v664_v39  ;;  %vm409_vm12 = vmor %vm407_vm10, %vm408_vm8 }
 0x1b7   : > { %v823_v45 = vadd.f32 1.0, %v666_v42  ;;  %v370_v46 = vsel %vm367_vm7, %v369_v40, %v365_v43  ;;  %v404_v47 = vsub.f32 1.0, %v403_v41  ;;  %v668_v48 = vpop.eup %667  ;;  %vm379_vm13 = vmor %vm377_vm11, %vm378_vm9  ;;  %v428_v29 = vand.u32 2147483648, %v818_v37 }
 0x1b8   : > { %479 = vperm.xlu2 %646, %v370_v46   ;;  %v374_v50 = vsub.f32 1.0, %v373_v44  ;;  %v827_v52 = vpop.eup %669  ;;  %v830_v53 = vadd.f32 1.0, %v668_v48  ;;  %v426_v30 = vand.u32 2147483647, %v818_v37  ;;  %vm422_vm1 = vweird.f32 %v818_v37 }
 0x1b9   : > { %675 = vrcp.f32 %v823_v45  ;;  %v405_v54 = vmul.f32 %v662_v36, %v404_v47  ;;  %v448_v3 = vmul.f32 %v827_v52, %v815_v28  ;;  %v398_v34 = vand.u32 2147483648, %v823_v45 }
 0x1ba   : > { %v375_v56 = vmul.f32 %v664_v39, %v374_v50  ;;  %677 = vrcp.f32 %v830_v53  ;;  %v396_v38 = vand.u32 2147483647, %v823_v45  ;;  %v429_v41 = vor.u32 1.1754944e-38, %v428_v29 }
 0x1bb   : > { %v672_v58 = vpop.eup %671  ;;  %v406_v59 = vadd.f32 %v662_v36, %v405_v54  ;;  %v449_v26 = vsub.f32 1.0, %v448_v3  ;;  %vm392_vm5 = vweird.f32 %v823_v45  ;;  %vm427_vm6 = vcmp.eq.f32.partialorder %v426_v30, 8.507059e+37 }
 0x1bc   : > { %v674_v60 = vpop.eup %673  ;;  %v836_v61 = vadd.f32 1.0, %v672_v58  ;;  %v376_v63 = vadd.f32 %v664_v39, %v375_v56  ;;  %vm453_vm7 = vweird.f32 %v827_v52  ;;  %v399_v46 = vor.u32 1.1754944e-38, %v398_v34 }
 0x1bd   : > { %v410_v5 = vsel %vm409_vm12, %v662_v36, %v406_v59  ;;  %v418_v15 = vmul.f32 %v674_v60, %v818_v37  ;;  %vm423_vm0 = vweird.f32 %v674_v60  ;;  %v458_v47 = vand.u32 2147483648, %v815_v28  ;;  %vm860_vm10 = vmor %vm452_vm2, %vm453_vm7 }
 0x1be   : > { %679 = vrcp.f32 %v836_v61  ;;  %v380_v16 = vsel %vm379_vm13, %v664_v39, %v376_v63  ;;  %v415_v22 = vsel %vm412_vm14, %v414_v62, %v410_v5  ;;  %vm424_vm3 = vmor %vm422_vm1, %vm423_vm0  ;;  %v450_v39 = vmul.f32 %v827_v52, %v449_v26 }
 0x1bf   : > { %v676_v17 = vpop.eup %675  ;;  %v385_v23 = vsel %vm382_vm15, %v384_v8, %v380_v16  ;;  %v419_v24 = vsub.f32 1.0, %v418_v15  ;;  %vm397_vm9 = vcmp.eq.f32.partialorder %v396_v38, 8.507059e+37  ;;  %v459_v57 = vor.u32 1.1754944e-38, %v458_v47 }
 0x1c0   : > { %494 = vperm.xlu2 %646, %v415_v22   ;;  %484 = vperm.xlu0 %647, %v385_v23   ;;  %v388_v25 = vmul.f32 %v676_v17, %v823_v45  ;;  %v678_v32 = vpop.eup %677  ;;  %vm393_vm4 = vweird.f32 %v676_v17  ;;  %v451_v50 = vadd.f32 %v827_v52, %v450_v39  ;;  %v456_v45 = vand.u32 2147483647, %v815_v28 }
 0x1c1   : > { %v420_v27 = vmul.f32 %v674_v60, %v419_v24  ;;  %v463_v43 = vmul.f32 %v678_v32, %v830_v53  ;;  %vm394_vm8 = vmor %vm392_vm5, %vm393_vm4  ;;  %v443_v59 = vand.u32 2147483648, %v836_v61  ;;  %vm437_vm13 = vweird.f32 %v836_v61 }
 0x1c2   : > { %v389_v31 = vsub.f32 1.0, %v388_v25  ;;  %vm457_vm12 = vcmp.eq.f32.partialorder %v456_v45, 8.507059e+37  ;;  %v441_v28 = vand.u32 2147483647, %v836_v61  ;;  %vm467_vm0 = vweird.f32 %v830_v53 }
 0x1c3   : > { %v421_v33 = vadd.f32 %v674_v60, %v420_v27  ;;  %v464_v56 = vsub.f32 1.0, %v463_v43  ;;  %v444_v5 = vor.u32 1.1754944e-38, %v443_v59  ;;  %vm468_vm1 = vweird.f32 %v678_v32 }
 0x1c4   : > { %v680_v35 = vpop.eup %679  ;;  %v390_v36 = vmul.f32 %v676_v17, %v389_v31  ;;  %vm442_vm15 = vcmp.eq.f32.partialorder %v441_v28, 8.507059e+37  ;;  %v473_v15 = vand.u32 2147483648, %v830_v53  ;;  %v471_v16 = vand.u32 2147483647, %v830_v53  ;;  %vm469_vm2 = vmor %vm467_vm0, %vm468_vm1 }
 0x1c5   : > { %v425_v40 = vsel %vm424_vm3, %v674_v60, %v421_v33  ;;  %v433_v42 = vmul.f32 %v680_v35, %v836_v61  ;;  %vm438_vm11 = vweird.f32 %v680_v35  ;;  %v455_v60 = vsel %vm860_vm10, %v827_v52, %v451_v50 }
 0x1c6   : > { %v391_v37 = vadd.f32 %v676_v17, %v390_v36  ;;  %v430_v44 = vsel %vm427_vm6, %v429_v41, %v425_v40  ;;  %vm439_vm14 = vmor %vm437_vm13, %vm438_vm11  ;;  %v465_v63 = vmul.f32 %v678_v32, %v464_v56  ;;  %v460_v3 = vsel %vm457_vm12, %v459_v57, %v455_v60 }
 0x1c7   : > { %v434_v48 = vsub.f32 1.0, %v433_v42  ;;  %v474_v61 = vor.u32 1.1754944e-38, %v473_v15  ;;  %vm472_vm3 = vcmp.eq.f32.partialorder %v471_v16, 8.507059e+37 }
 0x1c8   : > { %499 = vperm.xlu2 %646, %v430_v44   ;;  %v395_v49 = vsel %vm394_vm8, %v676_v17, %v391_v37  ;;  %v466_v52 = vadd.f32 %v678_v32, %v465_v63 }
 0x1c9   : > { %v400_v51 = vsel %vm397_vm9, %v399_v46, %v395_v49  ;;  %v435_v55 = vmul.f32 %v680_v35, %v434_v48 }
 0x1ca   : > { %489 = vperm.xlu1 %648, %v400_v51   ;;  %v470_v17 = vsel %vm469_vm2, %v678_v32, %v466_v52 }
 0x1cb   : > { %v436_v58 = vadd.f32 %v680_v35, %v435_v55  ;;  %v475_v22 = vsel %vm472_vm3, %v474_v61, %v470_v17 }
 0x1cd   : > { %v440_v62 = vsel %vm439_vm14, %v680_v35, %v436_v58 }
 0x1ce   : > { %v445_v8 = vsel %vm442_vm15, %v444_v5, %v440_v62 }
 0x1d0   : > { %509 = vperm.xlu2 %646, %v460_v3  }
 0x1d2   : > { %504 = vperm.xlu1 %648, %v445_v8  }
 0x1da   : > { %514 = vperm.xlu1 %648, %v475_v22  }
 0x212   : > { %v480_v23 = vpop.permute.xlu2 %479 }
 0x213   : > { %v517_v53 = vmul.f32 %v480_v23, %v766_v20  ;;  %v518_v24 = vmul.f32 %v480_v23, %v768_v21 }
 0x215   : > { %533 = vst [vmem:[%s878_s11] sm:$0xff] %v517_v53 }
 0x216   : > { %534 = vst [vmem:[%s878_s11 + $0x8] sm:$0xff] %v518_v24 }
 0x21a   : > { %v495_v25 = vpop.permute.xlu2 %494 }
 0x21b   : > { %v523_v26 = vmul.f32 %v495_v25, %v738_v6  ;;  %v524_v27 = vmul.f32 %v495_v25, %v740_v7 }
 0x21d   : > { %539 = vst [vmem:[%s878_s11 + $0x30] sm:$0xff] %v523_v26 }
 0x21e   : > { %540 = vst [vmem:[%s878_s11 + $0x38] sm:$0xff] %v524_v27 }
 0x222   : > { %v500_v29 = vpop.permute.xlu2 %499 }
 0x223   : > { %v525_v30 = vmul.f32 %v500_v29, %v748_v11  ;;  %v526_v20 = vmul.f32 %v500_v29, %v750_v12 }
 0x225   : > { %541 = vst [vmem:[%s878_s11 + $0x40] sm:$0xff] %v525_v30 }
 0x226   : > { %542 = vst [vmem:[%s878_s11 + $0x48] sm:$0xff] %v526_v20 }
 0x22a   : > { %v510_v21 = vpop.permute.xlu2 %509 }
 0x22b   : > { %v529_v31 = vmul.f32 %v510_v21, %v744_v9  ;;  %v530_v6 = vmul.f32 %v510_v21, %v746_v10 }
 0x22d   : > { %545 = vst [vmem:[%s878_s11 + $0x60] sm:$0xff] %v529_v31 }
 0x22e   : > { %546 = vst [vmem:[%s878_s11 + $0x68] sm:$0xff] %v530_v6 }
 0x232   : > { %v485_v7 = vpop.permute.xlu0 %484 }
 0x233   : > { %v519_v32 = vmul.f32 %v485_v7, %v762_v18  ;;  %v520_v11 = vmul.f32 %v485_v7, %v764_v19 }
 0x235   : > { %535 = vst [vmem:[%s878_s11 + $0x10] sm:$0xff] %v519_v32 }
 0x236   : > { %536 = vst [vmem:[%s878_s11 + $0x18] sm:$0xff] %v520_v11 }
 0x23c   : > { %v490_v12 = vpop.permute.xlu1 %489 }
 0x23d   : > { %v521_v33 = vmul.f32 %v490_v12, %v752_v13  ;;  %v522_v9 = vmul.f32 %v490_v12, %v754_v14 }
 0x23f   : > { %537 = vst [vmem:[%s878_s11 + $0x20] sm:$0xff] %v521_v33 }
 0x240   : > { %538 = vst [vmem:[%s878_s11 + $0x28] sm:$0xff] %v522_v9 }
 0x244   : > { %v505_v10 = vpop.permute.xlu1 %504 }
 0x245   : > { %v527_v34 = vmul.f32 %v505_v10, %v730_v2  ;;  %v528_v35 = vmul.f32 %v505_v10, %v734_v4 }
 0x247   : > { %543 = vst [vmem:[%s878_s11 + $0x50] sm:$0xff] %v527_v34 }
 0x248   : > { %544 = vst [vmem:[%s878_s11 + $0x58] sm:$0xff] %v528_v35 }
 0x24c   : > { %v515_v18 = vpop.permute.xlu1 %514 }
 0x24d   : > { %v531_v19 = vmul.f32 %v515_v18, %v726_v0  ;;  %v532_v36 = vmul.f32 %v515_v18, %v728_v1 }
 0x24f   : > { %547 = vst [vmem:[%s878_s11 + $0x70] sm:$0xff] %v531_v19 }
 0x250   : > { %548 = vst [vmem:[%s878_s11 + $0x78] sm:$0xff] %v532_v36 }
 0x251 PF: > { %s13_s12 = sadd.s32 1, %s687_s12  }
 0x252   : > { %p10_p4 = scmp.ge.s32.totalorder %s13_s12, 4  }
 0x254   :  { %12 = sbr.rel (!%p10_p4) target bundleno = 1 (0x1), region = 62 }

</bundles_post_ra>
